<compile_context>
chip_gen: v6e
topology: v6e:2x2x1
jax: 0.10.0
libtpu: 0.0.40
codegen_flags: <defaults>
</compile_context>

<pallas_src>
import jax
import jax.numpy as jnp
import numpy as np
from jax.experimental import pallas as pl
from jax.experimental.pallas import tpu as pltpu


def _round_up(x, m):
    return ((x + m - 1) // m) * m


def _layout(obs_dim, h_dim, z_dim):
    obs_sub = _round_up(obs_dim, 16)      # bf16 sublane tile for enc_w1 rows
    h_pad = _round_up(h_dim, 128)
    z_pad = _round_up(z_dim, 128)
    obs_lane = _round_up(obs_dim, 128)
    w_lanes = max(h_pad, z_pad + obs_lane)
    # Pack [z | o_rec] into a single 128-lane output block when they fit,
    # otherwise fall back to two 128-aligned blocks.
    packed = (z_pad == 128 and obs_lane == 128 and (z_dim + obs_dim) <= 128)
    out_w = 128 if packed else (z_pad + obs_lane)
    return obs_sub, h_pad, z_pad, obs_lane, w_lanes, packed, out_w


def make_ae_kernel(obs_dim, h_dim, z_dim):
    obs_sub, h_pad, z_pad, obs_lane, _, packed, _ = _layout(obs_dim, h_dim, z_dim)
    r1 = obs_sub                # start of dec_w1 row-block
    r2 = obs_sub + z_pad        # start of [enc_w2 | dec_w2] row-block

    def kernel(o_ref, w_ref, b_ref, out_ref):
        # Static, tile-aligned views into the packed bf16 weight slab.
        ew1 = w_ref[0:r1, 0:h_pad]                           # (obs_sub, h_pad)
        dw1 = w_ref[r1:r2, 0:h_pad]                          # (z_pad,   h_pad)
        ew2 = w_ref[r2:r2 + h_pad, 0:z_pad]                  # (h_pad,   z_pad)
        dw2 = w_ref[r2:r2 + h_pad, z_pad:z_pad + obs_lane]   # (h_pad, obs_lane)
        # f32 bias rows from the packed bias slab.
        eb1 = b_ref[0:1, 0:h_pad]
        db1 = b_ref[1:2, 0:h_pad]
        eb2 = b_ref[2:3, 0:z_pad]
        db2 = b_ref[2:3, z_pad:z_pad + obs_lane]

        o = o_ref[...]   # already bf16 (cast fused into the wrapper's pad)

        # ---- encoder: Linear -> ReLU -> Linear (bf16 MXU operands, f32 acc) --
        h = jnp.maximum(
            jnp.dot(o, ew1, preferred_element_type=jnp.float32) + eb1, 0.0)
        z = jnp.dot(h.astype(jnp.bfloat16), ew2,
                    preferred_element_type=jnp.float32) + eb2        # (TB, z_pad)

        # ---- decoder: Linear -> ReLU -> Linear (padded z cols are exactly 0) -
        dh = jnp.maximum(
            jnp.dot(z.astype(jnp.bfloat16), dw1,
                    preferred_element_type=jnp.float32) + db1, 0.0)
        o_rec = jnp.dot(dh.astype(jnp.bfloat16), dw2,
                        preferred_element_type=jnp.float32) + db2    # (TB, obs_lane)

        if packed:
            # z lanes >= z_dim and o_rec lanes >= obs_dim are exactly zero, so
            # one XLU lane-roll + VPU add packs [ z | o_rec | 0... ] into a
            # single dense 128-lane f32 block -> unmasked full-lane store and
            # half the HBM writeback bytes.
            out_ref[...] = z + pltpu.roll(o_rec, shift=z_dim, axis=1)
        else:
            out_ref[:, 0:z_pad] = z
            out_ref[:, z_pad:z_pad + obs_lane] = o_rec

    return kernel


def pack_params(params, obs_dim, h_dim, z_dim):
    """Pack 8 raw f32 tensors into one bf16 weight slab + one f32 bias slab.

    Invariant: all padding is exactly zero (decoder correctness and the packed
    output slab rely on it).
    """
    obs_sub, h_pad, z_pad, obs_lane, w_lanes, _, _ = _layout(obs_dim, h_dim, z_dim)

    def pad2(x, rows, cols):
        return jnp.pad(x, ((0, rows - x.shape[0]), (0, cols - x.shape[1])))

    def pad1(x, n):
        return jnp.pad(x, (0, n - x.shape[0]))

    ew1 = pad2(params["enc_w1"], obs_sub, w_lanes)
    dw1 = pad2(params["dec_w1"], z_pad, w_lanes)
    w2 = jnp.concatenate(
        [pad2(params["enc_w2"], h_pad, z_pad),
         pad2(params["dec_w2"], h_pad, obs_lane)], axis=1)
    w2 = pad2(w2, h_pad, w_lanes)
    w_pack = jnp.concatenate([ew1, dw1, w2], axis=0).astype(jnp.bfloat16)

    b_rows = [
        pad1(params["enc_b1"], w_lanes),
        pad1(params["dec_b1"], w_lanes),
        pad1(jnp.concatenate([pad1(params["enc_b2"], z_pad),
                              pad1(params["dec_b2"], obs_lane)]), w_lanes),
    ]
    b_rows += [jnp.zeros((w_lanes,), jnp.float32)] * (8 - len(b_rows))
    b_pack = jnp.stack(b_rows).astype(jnp.float32)
    return w_pack, b_pack


def ae_forward(o, w_pack, b_pack, *, obs_dim, h_dim, z_dim, row_tile=512):
    """Fused AE forward: o -> (z, o_rec), batch-tiled Pallas call."""
    obs_sub, h_pad, z_pad, obs_lane, _, packed, out_w = _layout(
        obs_dim, h_dim, z_dim)
    B = o.shape[0]

    # Row tile: <=512 rows (keeps per-step VMEM ~2.5 MiB on every generation),
    # multiple of 16 for bf16 sublane tiling.
    tb = _round_up(min(row_tile, _round_up(B, 16)), 16)
    b_pad = _round_up(B, tb)

    # Fuse zero-pad (rows to tile multiple, cols to obs_sub) + f32->bf16 cast.
    o_p = jnp.pad(o, ((0, b_pad - B), (0, obs_sub - obs_dim))).astype(jnp.bfloat16)

    wr, wc = w_pack.shape
    br, bc = b_pack.shape

    out = pl.pallas_call(
        make_ae_kernel(obs_dim, h_dim, z_dim),
        out_shape=jax.ShapeDtypeStruct((b_pad, out_w), jnp.float32),
        grid=(b_pad // tb,),
        in_specs=[
            pl.BlockSpec((tb, obs_sub), lambda i: (i, 0)),   # batch-tiled input
            pl.BlockSpec((wr, wc), lambda i: (0, 0)),        # weights: VMEM-resident
            pl.BlockSpec((br, bc), lambda i: (0, 0)),        # biases:  VMEM-resident
        ],
        out_specs=pl.BlockSpec((tb, out_w), lambda i: (i, 0)),
        compiler_params=pltpu.CompilerParams(
            dimension_semantics=("parallel",)),               # 2nd TC on v7x
    )(o_p, w_pack, b_pack)

    if packed:
        z = out[:B, :z_dim]
        o_rec = out[:B, z_dim:z_dim + obs_dim]
    else:
        z = out[:B, :z_dim]
        o_rec = out[:B, z_pad:z_pad + obs_dim]
    return z, o_rec


def init_params(key, obs_dim, h_dim, z_dim):
    ks = jax.random.split(key, 8)

    def w(k, shape):
        return (0.05 * jax.random.normal(k, shape)).astype(jnp.float32)

    def b(k, shape):
        return (0.01 * jax.random.normal(k, shape)).astype(jnp.float32)

    return {
        "enc_w1": w(ks[0], (obs_dim, h_dim)), "enc_b1": b(ks[1], (h_dim,)),
        "enc_w2": w(ks[2], (h_dim, z_dim)),   "enc_b2": b(ks[3], (z_dim,)),
        "dec_w1": w(ks[4], (z_dim, h_dim)),   "dec_b1": b(ks[5], (h_dim,)),
        "dec_w2": w(ks[6], (h_dim, obs_dim)), "dec_b2": b(ks[7], (obs_dim,)),
    }


def reference_forward(o, p):
    """Pure-JAX f32 reference of the PyTorch semantics."""
    h = jnp.maximum(o @ p["enc_w1"] + p["enc_b1"], 0.0)
    z = h @ p["enc_w2"] + p["enc_b2"]
    dh = jnp.maximum(z @ p["dec_w1"] + p["dec_b1"], 0.0)
    o_rec = dh @ p["dec_w2"] + p["dec_b2"]
    return z, o_rec


if __name__ == "__main__":
    B, obs_dim, h_dim, z_dim = 8, 32, 256, 20

    key = jax.random.PRNGKey(0)
    k_o, k_p = jax.random.split(key)
    o = jax.random.normal(k_o, (B, obs_dim), dtype=jnp.float32)
    params = init_params(k_p, obs_dim, h_dim, z_dim)
    w_pack, b_pack = pack_params(params, obs_dim, h_dim, z_dim)

    z, o_rec = ae_forward(o, w_pack, b_pack,
                          obs_dim=obs_dim, h_dim=h_dim, z_dim=z_dim)
    jax.block_until_ready((z, o_rec))

    z_ref, o_rec_ref = reference_forward(o, params)
    # bf16 MXU operands, f32 accumulation -> loosened tolerance vs f32 ref.
    np.testing.assert_allclose(np.asarray(z), np.asarray(z_ref),
                               rtol=2e-2, atol=1e-2)
    np.testing.assert_allclose(np.asarray(o_rec), np.asarray(o_rec_ref),
                               rtol=2e-2, atol=1e-2)

    print("KERNEL_OK")
</pallas_src>

<mosaic_0001>
module attributes {stable_mosaic.version = 11 : i64} {
  func.func @kernel(%arg0: i32, %arg1: memref<16x32xbf16, #tpu.memory_space<vmem>>, %arg2: memref<416x256xbf16, #tpu.memory_space<vmem>>, %arg3: memref<8x256xf32, #tpu.memory_space<vmem>>, %arg4: memref<16x128xf32, #tpu.memory_space<vmem>>) attributes {dimension_semantics = [#tpu.dimension_semantics<parallel>], iteration_bounds = array<i64: 1>, scalar_prefetch = 0 : i64, scratch_operands = 0 : i64, tpu.core_type = #tpu.core_type<tc>, window_params = [{transform_indices = @transform_0, window_bounds = array<i64: 16, 32>}, {pipeline_mode = #tpu.pipeline_mode<synchronous>, transform_indices = @transform_1, window_bounds = array<i64: 416, 256>}, {pipeline_mode = #tpu.pipeline_mode<synchronous>, transform_indices = @transform_2, window_bounds = array<i64: 8, 256>}, {transform_indices = @transform_3, window_bounds = array<i64: 16, 128>}]} {
    %c0 = arith.constant 0 : index
    %c0_0 = arith.constant 0 : index
    %0 = vector.load %arg2[%c0, %c0_0] : memref<416x256xbf16, #tpu.memory_space<vmem>>, vector<32x256xbf16>
    %c32 = arith.constant 32 : index
    %c0_1 = arith.constant 0 : index
    %1 = vector.load %arg2[%c32, %c0_1] : memref<416x256xbf16, #tpu.memory_space<vmem>>, vector<128x256xbf16>
    %c160 = arith.constant 160 : index
    %c0_2 = arith.constant 0 : index
    %2 = vector.load %arg2[%c160, %c0_2] : memref<416x256xbf16, #tpu.memory_space<vmem>>, vector<256x128xbf16>
    %c160_3 = arith.constant 160 : index
    %c128 = arith.constant 128 : index
    %3 = vector.load %arg2[%c160_3, %c128] : memref<416x256xbf16, #tpu.memory_space<vmem>>, vector<256x128xbf16>
    %c0_4 = arith.constant 0 : index
    %c0_5 = arith.constant 0 : index
    %4 = vector.load %arg3[%c0_4, %c0_5] : memref<8x256xf32, #tpu.memory_space<vmem>>, vector<1x256xf32>
    %c1 = arith.constant 1 : index
    %c0_6 = arith.constant 0 : index
    %5 = vector.load %arg3[%c1, %c0_6] : memref<8x256xf32, #tpu.memory_space<vmem>>, vector<1x256xf32>
    %c2 = arith.constant 2 : index
    %c0_7 = arith.constant 0 : index
    %6 = vector.load %arg3[%c2, %c0_7] : memref<8x256xf32, #tpu.memory_space<vmem>>, vector<1x128xf32>
    %c2_8 = arith.constant 2 : index
    %c128_9 = arith.constant 128 : index
    %7 = vector.load %arg3[%c2_8, %c128_9] : memref<8x256xf32, #tpu.memory_space<vmem>>, vector<1x128xf32>
    %c0_10 = arith.constant 0 : index
    %c0_11 = arith.constant 0 : index
    %8 = vector.load %arg1[%c0_10, %c0_11] : memref<16x32xbf16, #tpu.memory_space<vmem>>, vector<16x32xbf16>
    %cst = arith.constant dense<0.000000e+00> : vector<16x256xf32>
    %9 = tpu.matmul %8, %0, %cst {dimension_numbers = #tpu.dot_dimension_numbers<[1], [0], [0], [1], [0, 0, 1, 1], [], []>} : vector<16x32xbf16>, vector<32x256xbf16>, vector<16x256xf32> -> vector<16x256xf32>
    %10 = vector.broadcast %4 : vector<1x256xf32> to vector<16x256xf32>
    %11 = arith.addf %9, %10 : vector<16x256xf32>
    %cst_12 = arith.constant 0.000000e+00 : f32
    %12 = vector.broadcast %cst_12 : f32 to vector<16x256xf32>
    %13 = arith.maximumf %11, %12 : vector<16x256xf32>
    %14 = arith.truncf %13 : vector<16x256xf32> to vector<16x256xbf16>
    %cst_13 = arith.constant dense<0.000000e+00> : vector<16x128xf32>
    %15 = tpu.matmul %14, %2, %cst_13 {dimension_numbers = #tpu.dot_dimension_numbers<[1], [0], [0], [1], [0, 0, 1, 1], [], []>} : vector<16x256xbf16>, vector<256x128xbf16>, vector<16x128xf32> -> vector<16x128xf32>
    %16 = vector.broadcast %6 : vector<1x128xf32> to vector<16x128xf32>
    %17 = arith.addf %15, %16 : vector<16x128xf32>
    %18 = arith.truncf %17 : vector<16x128xf32> to vector<16x128xbf16>
    %cst_14 = arith.constant dense<0.000000e+00> : vector<16x256xf32>
    %19 = tpu.matmul %18, %1, %cst_14 {dimension_numbers = #tpu.dot_dimension_numbers<[1], [0], [0], [1], [0, 0, 1, 1], [], []>} : vector<16x128xbf16>, vector<128x256xbf16>, vector<16x256xf32> -> vector<16x256xf32>
    %20 = vector.broadcast %5 : vector<1x256xf32> to vector<16x256xf32>
    %21 = arith.addf %19, %20 : vector<16x256xf32>
    %cst_15 = arith.constant 0.000000e+00 : f32
    %22 = vector.broadcast %cst_15 : f32 to vector<16x256xf32>
    %23 = arith.maximumf %21, %22 : vector<16x256xf32>
    %24 = arith.truncf %23 : vector<16x256xf32> to vector<16x256xbf16>
    %cst_16 = arith.constant dense<0.000000e+00> : vector<16x128xf32>
    %25 = tpu.matmul %24, %3, %cst_16 {dimension_numbers = #tpu.dot_dimension_numbers<[1], [0], [0], [1], [0, 0, 1, 1], [], []>} : vector<16x256xbf16>, vector<256x128xbf16>, vector<16x128xf32> -> vector<16x128xf32>
    %26 = vector.broadcast %7 : vector<1x128xf32> to vector<16x128xf32>
    %27 = arith.addf %25, %26 : vector<16x128xf32>
    %c20_i32 = arith.constant 20 : i32
    %28 = tpu.dynamic_rotate %27 by %c20_i32 dim 1 : vector<16x128xf32>, i32 -> vector<16x128xf32>
    %29 = arith.addf %17, %28 : vector<16x128xf32>
    %c0_17 = arith.constant 0 : index
    %c0_18 = arith.constant 0 : index
    %30 = vector.load %arg4[%c0_17, %c0_18] : memref<16x128xf32, #tpu.memory_space<vmem>>, vector<16x128xf32>
    tpu.vector_store %arg4[%c0_17, %c0_18], %29 {strides = array<i32>} : memref<16x128xf32, #tpu.memory_space<vmem>>, vector<16x128xf32>,
    return
  }
  func.func @transform_0(%arg0: i32) -> (i32, i32) {
    %c0_i32 = arith.constant 0 : i32
    %c0_i32_0 = arith.constant 0 : i32
    return %arg0, %c0_i32 : i32, i32
  }
  func.func @transform_1(%arg0: i32) -> (i32, i32) {
    %c0_i32 = arith.constant 0 : i32
    %c0_i32_0 = arith.constant 0 : i32
    %c0_i32_1 = arith.constant 0 : i32
    return %c0_i32, %c0_i32_0 : i32, i32
  }
  func.func @transform_2(%arg0: i32) -> (i32, i32) {
    %c0_i32 = arith.constant 0 : i32
    %c0_i32_0 = arith.constant 0 : i32
    %c0_i32_1 = arith.constant 0 : i32
    return %c0_i32, %c0_i32_0 : i32, i32
  }
  func.func @transform_3(%arg0: i32) -> (i32, i32) {
    %c0_i32 = arith.constant 0 : i32
    %c0_i32_0 = arith.constant 0 : i32
    return %arg0, %c0_i32 : i32, i32
  }
}

</mosaic_0001>

<bundles_post_ra>
// kernel: tpu_custom_call.1
= control target key start
LH: loop header
LB: loop body
LE: loop exit
PB: predicated region body
PF: predicated region fallthrough
CT: control target
= control target key end

     0   :  { %8 = vsyncpa [#allocation3], 0  ;;  %s993_s0 = inlined_call_operand.hbm [shape: bf16[16,32], index: 0, kind: input, shape index: {}]   ;;  %s994_s1 = inlined_call_operand.hbm [shape: bf16[416,256], index: 1, kind: input, shape index: {}]   ;;  %s995_s2 = inlined_call_operand.hbm [shape: f32[8,256], index: 2, kind: input, shape index: {}]   ;;  %s996_s3 = inlined_call_operand.hbm [shape: f32[16,128], index: 3, kind: output, shape index: {}]  }
   0x1   :  { %9 = vsyncpa [#allocation6], 0 }
   0x2   :  { %10 = vsyncpa [#allocation4], 0  ;;  %s933_s12 = smov [#allocation5]  }
   0x3   :  { %s28_s13 = sshll.u32 %s933_s12, 4  ;;  %s29_s13 = int_to_ptr.vmem [resolvable:$true] %s28_s13 }
   0x4   :  { %s855_s14 = scalar_lea.vmem %s29_s13, 6656  ;;  %p860_p1 = scmp.lt.s32.totalorder %s29_s13, %s29_s13 }
   0x5   :  { %p856_p0 = scmp.ne.s32.totalorder %s29_s13, %s855_s14  ;;  %p861_p2 = scmp.lt.s32.totalorder %s855_s14, %s855_s14 }
   0x7   :  { %p862_p3 = por %p861_p2, %p860_p1 }
   0x9   :  { %p863_p4 = pnand %p862_p3, %p856_p0 }
   0xb   :  { %866 = shalt.err (!%p863_p4)
}
   0xc   :  { %s934_s15 = smov 128   ;;  %s935_s16 = smov 8  }
   0xd   :  { %34 = dma.hbm_to_vmem [thread:$0]  %s994_s1, 6656, %s29_s13, [#allocation6], %s934_s15, %s934_s15, %s935_s16  }
   0xe   :  { %s936_s19 = smov [#allocation2]  }
   0xf   :  { %s16_s20 = sshll.u32 %s936_s19, 4  ;;  %s17_s20 = int_to_ptr.vmem [resolvable:$true] %s16_s20 }
  0x10   :  { %s875_s21 = scalar_lea.vmem %s17_s20, 128  ;;  %p880_p6 = scmp.lt.s32.totalorder %s17_s20, %s17_s20 }
  0x11   :  { %p876_p5 = scmp.ne.s32.totalorder %s17_s20, %s875_s21  ;;  %p881_p7 = scmp.lt.s32.totalorder %s875_s21, %s875_s21 }
  0x13   :  { %p882_p8 = por %p881_p7, %p880_p6 }
  0x15   :  { %p883_p9 = pnand %p882_p8, %p876_p5 }
  0x17   :  { %886 = shalt.err (!%p883_p9)
}
  0x18   :  { %s937_s22 = smov 64   ;;  %s938_s23 = smov 4  }
  0x19   :  { %22 = dma.hbm_to_vmem [thread:$0]  %s993_s0, 128, %s17_s20, [#allocation3], %s937_s22, %s937_s22, %s938_s23  }
  0x1a   :  { %s939_s26 = smov [#allocation7]  }
  0x1b   :  { %s41_s27 = sshll.u32 %s939_s26, 4  ;;  %s42_s27 = int_to_ptr.vmem [resolvable:$true] %s41_s27 }
  0x1c   :  { %s895_s1 = scalar_lea.vmem %s42_s27, 256  ;;  %p900_p11 = scmp.lt.s32.totalorder %s42_s27, %s42_s27 }
  0x1d   :  { %p896_p10 = scmp.ne.s32.totalorder %s42_s27, %s895_s1  ;;  %p901_p12 = scmp.lt.s32.totalorder %s895_s1, %s895_s1 }
  0x1f   :  { %p902_p13 = por %p901_p12, %p900_p11 }
  0x21   :  { %p903_p0 = pnand %p902_p13, %p896_p10 }
  0x23   :  { %906 = shalt.err (!%p903_p0)
}
  0x24   :  { %44 = dma.hbm_to_vmem [thread:$0]  %s995_s2, 256, %s42_s27, [#allocation6]  }
  0x25   :  { %927 = dma.done.wait [#allocation3], 128  }
  0x26   :  { %928 = vsyncadd [#allocation3], 4294967168 }
  0x27   :  { %929 = dma.done.wait [#allocation6], 6912  }
  0x28   :  { %930 = vsyncadd [#allocation6], 4294960384  ;;  %v940_v0 = vmov 0   ;;  %v784_v1 = vld [vmem:[#allocation5 + $0x14] ss:$8 sps:$4 sm:$0xff]   ;;  %vm182_vm0 = vcmask 261120   ;;  %v147_v32 = vlaneseq }
  0x29   :  { %218 = vmatprep.mubr.bf16.mxu0 %v940_v0  ;;  %v786_v2 = vld [vmem:[#allocation5 + $0x10] ss:$8 sps:$4 sm:$0xff]   ;;  %198 = vmatprep.subr.bf16.mxu0 %v784_v1  ;;  %v787_v3 = vld [vmem:[#allocation5 + $0x4] ss:$8 sps:$4 sm:$0xff]   ;;  %v789_v4 = vld [vmem:[#allocation5] ss:$8 sps:$4 sm:$0xff]  }
  0x2a   :  { %199 = vmatpush1.bf16.msra.mxu0 %v786_v2  ;;  %v790_v5 = vld [vmem:[#allocation2] sm:$0xff]   ;;  %v793_v8 = vld [vmem:[#allocation5 + $0x180] ss:$8 sps:$4 sm:$0xff]   ;;  %v812_v24 = vld [vmem:[#allocation5 + $0x84] ss:$8 sps:$4 sm:$0xff]   ;;  %v975_v33 = vshrl.u32 %v147_v32, 7 }
  0x2b   :  { %200 = vmatprep.subr.bf16.mxu0 %v787_v3  ;;  %v791_v6 = vld [vmem:[#allocation5 + $0x190] ss:$8 sps:$4 sm:$0xff]   ;;  %v794_v9 = vld [vmem:[#allocation5 + $0x100] ss:$8 sps:$4 sm:$0xff]   ;;  %v809_v23 = vld [vmem:[#allocation5 + $0x94] ss:$8 sps:$4 sm:$0xff]  }
  0x2c   :  { %v792_v7 = vld [vmem:[#allocation5 + $0x110] ss:$8 sps:$4 sm:$0xff]   ;;  %730 = vmatprep.subr.bf16.mxu1 %v791_v6  ;;  %v797_v12 = vld [vmem:[#allocation5 + $0x160] ss:$8 sps:$4 sm:$0xff]   ;;  %v815_v26 = vld [vmem:[#allocation5 + $0x74] ss:$8 sps:$4 sm:$0xff]  }
  0x2d   :  { %731 = vmatpush3.bf16.msra.mxu1 %v792_v7  ;;  %v795_v10 = vld [vmem:[#allocation5 + $0x170] ss:$8 sps:$4 sm:$0xff]   ;;  %v798_v13 = vld [vmem:[#allocation5 + $0xe0] ss:$8 sps:$4 sm:$0xff]   ;;  %v818_v28 = vld [vmem:[#allocation5 + $0x64] ss:$8 sps:$4 sm:$0xff]  }
  0x2e   :  { %201 = vmatpush1.bf16.msra.mxu0 %v789_v4  ;;  %732 = vmatprep.subr.bf16.mxu1 %v793_v8  ;;  %v796_v11 = vld [vmem:[#allocation5 + $0xf0] ss:$8 sps:$4 sm:$0xff]   ;;  %v801_v16 = vld [vmem:[#allocation5 + $0x140] ss:$8 sps:$4 sm:$0xff]   ;;  %v821_v30 = vld [vmem:[#allocation5 + $0x54] ss:$8 sps:$4 sm:$0xff]  }
  0x2f   :  { %v799_v14 = vld [vmem:[#allocation5 + $0x150] ss:$8 sps:$4 sm:$0xff]   ;;  %v802_v17 = vld [vmem:[#allocation5 + $0xc0] ss:$8 sps:$4 sm:$0xff]   ;;  %464 = vmatprep.subr.bf16.mxu0 %v809_v23  ;;  %v153_v34 = vsub.s32 1, %v975_v33  ;;  %v149_v35 = vsub.s32 0, %v975_v33 }
  0x30   :  { %v800_v15 = vld [vmem:[#allocation5 + $0xd0] ss:$8 sps:$4 sm:$0xff]   ;;  %v805_v20 = vld [vmem:[#allocation5 + $0x120] ss:$8 sps:$4 sm:$0xff]   ;;  %v824_v53 = vld [vmem:[#allocation5 + $0x44] ss:$8 sps:$4 sm:$0xff]  }
  0x31   :  { %681 = vmatmul.mubr.msk.bf16.vlgmr.msra.gmra.mxu0 %vm182_vm0, %v790_v5  ;;  %733 = vmatpush3.bf16.msra.mxu1 %v794_v9  ;;  %v803_v18 = vld [vmem:[#allocation5 + $0x130] ss:$8 sps:$4 sm:$0xff]   ;;  %v806_v21 = vld [vmem:[#allocation5 + $0xa0] ss:$8 sps:$4 sm:$0xff]   ;;  %v827_v55 = vld [vmem:[#allocation5 + $0x34] ss:$8 sps:$4 sm:$0xff]  }
  0x32   :  { %496 = vmatprep.mubr.bf16.mxu0 %v940_v0  ;;  %734 = vmatprep.subr.bf16.mxu1 %v795_v10  ;;  %v804_v19 = vld [vmem:[#allocation5 + $0xb0] ss:$8 sps:$4 sm:$0xff]   ;;  %v810_v25 = vld [vmem:[#allocation5 + $0x80] ss:$8 sps:$4 sm:$0xff]   ;;  %v830_v57 = vld [vmem:[#allocation5 + $0x24] ss:$8 sps:$4 sm:$0xff]  }
  0x33   :  { %v807_v22 = vld [vmem:[#allocation5 + $0x90] ss:$8 sps:$4 sm:$0xff]   ;;  %v816_v29 = vld [vmem:[#allocation5 + $0x60] ss:$8 sps:$4 sm:$0xff]   ;;  %v831_v59 = vld [vmem:[#allocation5 + $0x194] ss:$8 sps:$4 sm:$0xff]  }
  0x34   :  { %465 = vmatpush1.bf16.msra.mxu0 %v807_v22  ;;  %v813_v27 = vld [vmem:[#allocation5 + $0x70] ss:$8 sps:$4 sm:$0xff]   ;;  %v139_v36 = vld [vmem:[#allocation7] ss:$8 sm:$0x3]  ;;  %s941_s0 = smov 20  }
  0x35   :  { %735 = vmatpush3.bf16.msra.mxu1 %v796_v11  ;;  %466 = vmatprep.subr.bf16.mxu0 %v812_v24  ;;  %v819_v31 = vld [vmem:[#allocation5 + $0x50] ss:$8 sps:$4 sm:$0xff]   ;;  %v154_v38 = vrot.slane %v139_v36, %v153_v34  ;;  %v150_v39 = vrot.slane %v139_v36, %v149_v35  ;;  %v822_v54 = vld [vmem:[#allocation5 + $0x40] ss:$8 sps:$4 sm:$0xff]   ;;  %v832_v60 = vld [vmem:[#allocation5 + $0x114] ss:$8 sps:$4 sm:$0xff]  }
  0x36   :  { %736 = vmatprep.subr.bf16.mxu1 %v797_v12  ;;  %v825_v56 = vld [vmem:[#allocation5 + $0x30] ss:$8 sps:$4 sm:$0xff]   ;;  %v828_v58 = vld [vmem:[#allocation5 + $0x20] ss:$8 sps:$4 sm:$0xff]   ;;  %v833_v61 = vld [vmem:[#allocation5 + $0x184] ss:$8 sps:$4 sm:$0xff]  }
  0x37   :  { %v834_v62 = vld [vmem:[#allocation5 + $0x104] ss:$8 sps:$4 sm:$0xff]   ;;  %v835_v63 = vld [vmem:[#allocation5 + $0x174] ss:$8 sps:$4 sm:$0xff]   ;;  %v142_v9 = vld [vmem:[#allocation7 + $0x2] ss:$0 sm:$0xff] }
  0x38   :  { %467 = vmatpush1.bf16.msra.mxu0 %v810_v25  ;;  %v836_v0 = vld [vmem:[#allocation5 + $0xf4] ss:$8 sps:$4 sm:$0xff]   ;;  %v837_v1 = vld [vmem:[#allocation5 + $0x164] ss:$8 sps:$4 sm:$0xff]   ;;  %s942_s2 = smov [#allocation8]  }
  0x39   :  { %737 = vmatpush3.bf16.msra.mxu1 %v798_v13  ;;  %468 = vmatprep.subr.bf16.mxu0 %v815_v26  ;;  %v838_v2 = vld [vmem:[#allocation5 + $0xe4] ss:$8 sps:$4 sm:$0xff]   ;;  %v839_v3 = vld [vmem:[#allocation5 + $0x154] ss:$8 sps:$4 sm:$0xff]   ;;  %s663_s30 = sshll.u32 %s942_s2, 4  ;;  %s664_s30 = int_to_ptr.vmem [resolvable:$true] %s663_s30 }
  0x3a   :  { %738 = vmatprep.subr.bf16.mxu1 %v799_v14  ;;  %v840_v4 = vld [vmem:[#allocation5 + $0xd4] ss:$8 sps:$4 sm:$0xff]   ;;  %s907_s4 = scalar_lea.vmem %s664_s30, 256  ;;  %p912_p2 = scmp.lt.s32.totalorder %s664_s30, %s664_s30 }
  0x3b   :  { %p908_p1 = scmp.ne.s32.totalorder %s664_s30, %s907_s4  ;;  %p913_p3 = scmp.lt.s32.totalorder %s907_s4, %s907_s4 }
  0x3c   :  { %469 = vmatpush1.bf16.msra.mxu0 %v813_v27 }
  0x3d   :  { %739 = vmatpush3.bf16.msra.mxu1 %v800_v15  ;;  %470 = vmatprep.subr.bf16.mxu0 %v818_v28  ;;  %v841_v15 = vld [vmem:[#allocation5 + $0x144] ss:$8 sps:$4 sm:$0xff]   ;;  %p914_p4 = por %p913_p3, %p912_p2 }
  0x3e   :  { %740 = vmatprep.subr.bf16.mxu1 %v801_v16  ;;  %v842_v16 = vld [vmem:[#allocation5 + $0xc4] ss:$8 sps:$4 sm:$0xff]  }
  0x3f   :  { %p915_p5 = pnand %p914_p4, %p908_p1 }
  0x40   :  { %471 = vmatpush1.bf16.msra.mxu0 %v816_v29 }
  0x41   :  { %741 = vmatpush3.bf16.msra.mxu1 %v802_v17  ;;  %472 = vmatprep.subr.bf16.mxu0 %v821_v30  ;;  %v843_v17 = vld [vmem:[#allocation5 + $0x134] ss:$8 sps:$4 sm:$0xff]  }
  0x42   :  { %742 = vmatprep.subr.bf16.mxu1 %v803_v18  ;;  %v844_v18 = vld [vmem:[#allocation5 + $0xb4] ss:$8 sps:$4 sm:$0xff]  }
  0x44   :  { %473 = vmatpush1.bf16.msra.mxu0 %v819_v31 }
  0x45   :  { %743 = vmatpush3.bf16.msra.mxu1 %v804_v19  ;;  %474 = vmatprep.subr.bf16.mxu0 %v824_v53  ;;  %v845_v19 = vld [vmem:[#allocation5 + $0x124] ss:$8 sps:$4 sm:$0xff]  }
  0x46   :  { %744 = vmatprep.subr.bf16.mxu1 %v805_v20  ;;  %v846_v20 = vld [vmem:[#allocation5 + $0xa4] ss:$8 sps:$4 sm:$0xff]  }
  0x48   :  { %475 = vmatpush1.bf16.msra.mxu0 %v822_v54 }
  0x49   :  { %745 = vmatpush3.bf16.msra.mxu1 %v806_v21  ;;  %476 = vmatprep.subr.bf16.mxu0 %v827_v55  ;;  %v141_v21 = vld [vmem:[#allocation7 + $0x1] ss:$8 sm:$0x3] }
  0x4a   :  { %752 = vmatprep.subr.bf16.mxu1 %v831_v59  ;;  %v381_v23 = vrot.slane %v141_v21, %v153_v34  ;;  %v377_v24 = vrot.slane %v141_v21, %v149_v35 }
  0x4c   :  { %477 = vmatpush1.bf16.msra.mxu0 %v825_v56 }
  0x4d   :  { %478 = vmatprep.subr.bf16.mxu0 %v830_v57 }
  0x50   :  { %479 = vmatpush1.bf16.msra.mxu0 %v828_v58 }
  0xf1   :  { %v220_v37 = vpop.f32.mrf.mxu0 }
  0xf2   :  { %v221_v44 = vadd.f32 %v220_v37, %v150_v39 }
  0xf3   :  { %v222_v40 = vpop.f32.mrf.mxu0 }
  0xf4   :  { %v223_v42 = vadd.f32 %v222_v40, %v154_v38  ;;  %v229_v50 = vmax.f32 %v221_v44, 0.0 }
  0xf5   :  { %v224_v41 = vpop.f32.mrf.mxu0 }
  0xf6   :  { %v225_v43 = vadd.f32 %v224_v41, %v150_v39  ;;  %v230_v48 = vmax.f32 %v223_v42, 0.0  ;;  %v143_v42 = vld [vmem:[#allocation7 + $0xa] ss:$0 sm:$0xff] }
  0xf7   :  { %v226_v45 = vpop.f32.mrf.mxu0 }
  0xf8   :  { %v227_v46 = vadd.f32 %v226_v45, %v154_v38  ;;  %v231_v47 = vmax.f32 %v225_v43, 0.0 }
  0xfa   :  { %v232_v49 = vmax.f32 %v227_v46, 0.0  ;;  %v233_v52 = vpack.c.bf16 %v231_v47, %v229_v50 }
  0xfc   :  { %v234_v51 = vpack.c.bf16 %v232_v49, %v230_v48 }
  0xfe   :  { %363 = vmatprep.mubr.bf16.mxu1 %v234_v51 }
  0xff   :  { %364 = vmatmul.mubr.bf16.vlgmr.msra.gmra.mxu1 %v233_v52 }
 0x100   :  { %753 = vmatpush3.bf16.msra.mxu1 %v832_v60 }
 0x101   :  { %754 = vmatprep.subr.bf16.mxu1 %v833_v61 }
 0x104   :  { %755 = vmatpush3.bf16.msra.mxu1 %v834_v62 }
 0x105   :  { %756 = vmatprep.subr.bf16.mxu1 %v835_v63 }
 0x108   :  { %757 = vmatpush3.bf16.msra.mxu1 %v836_v0 }
 0x109   :  { %758 = vmatprep.subr.bf16.mxu1 %v837_v1 }
 0x10c   :  { %759 = vmatpush3.bf16.msra.mxu1 %v838_v2 }
 0x10d   :  { %760 = vmatprep.subr.bf16.mxu1 %v839_v3 }
 0x110   :  { %761 = vmatpush3.bf16.msra.mxu1 %v840_v4 }
 0x111   :  { %762 = vmatprep.subr.bf16.mxu1 %v841_v15 }
 0x114   :  { %763 = vmatpush3.bf16.msra.mxu1 %v842_v16 }
 0x115   :  { %764 = vmatprep.subr.bf16.mxu1 %v843_v17 }
 0x118   :  { %765 = vmatpush3.bf16.msra.mxu1 %v844_v18 }
 0x119   :  { %766 = vmatprep.subr.bf16.mxu1 %v845_v19 }
 0x11c   :  { %767 = vmatpush3.bf16.msra.mxu1 %v846_v20 }
 0x1bf   :  { %v746_v5 = vpop.f32.mrf.mxu1 }
 0x1c1   :  { %v747_v6 = vpop.f32.mrf.mxu1 }
 0x1c2   :  { %v748_v8 = vadd.f32 %v747_v6, %v746_v5 }
 0x1c3   :  { %v749_v7 = vpop.f32.mrf.mxu1 }
 0x1c4   :  { %v366_v12 = vadd.f32 %v748_v8, %v142_v9 }
 0x1c5   :  { %v750_v10 = vpop.f32.mrf.mxu1 }
 0x1c6   :  { %v751_v11 = vadd.f32 %v750_v10, %v749_v7 }
 0x1c8   :  { %v369_v13 = vadd.f32 %v751_v11, %v142_v9 }
 0x1ca   :  { %v372_v14 = vpack.c.bf16 %v369_v13, %v366_v12 }
 0x1cc   :  { %497 = vmatmul.mubr.bf16.vlgmr.msra.gmra.mxu0 %v372_v14 }
 0x28c   :  { %v498_v22 = vpop.f32.mrf.mxu0 }
 0x28d   :  { %v499_v29 = vadd.f32 %v498_v22, %v377_v24 }
 0x28e   :  { %v500_v25 = vpop.f32.mrf.mxu0 }
 0x28f   :  { %v501_v27 = vadd.f32 %v500_v25, %v381_v23  ;;  %v507_v38 = vmax.f32 %v499_v29, 0.0 }
 0x290   :  { %v502_v26 = vpop.f32.mrf.mxu0 }
 0x291   :  { %v503_v28 = vadd.f32 %v502_v26, %v377_v24  ;;  %v508_v36 = vmax.f32 %v501_v27, 0.0 }
 0x292   :  { %v504_v30 = vpop.f32.mrf.mxu0 }
 0x293   :  { %v505_v31 = vadd.f32 %v504_v30, %v381_v23  ;;  %v509_v32 = vmax.f32 %v503_v28, 0.0 }
 0x295   :  { %v510_v37 = vmax.f32 %v505_v31, 0.0  ;;  %v511_v40 = vpack.c.bf16 %v509_v32, %v507_v38 }
 0x297   :  { %v512_v39 = vpack.c.bf16 %v510_v37, %v508_v36 }
 0x299   :  { %641 = vmatprep.mubr.bf16.mxu1 %v512_v39 }
 0x29a   :  { %642 = vmatmul.mubr.bf16.vlgmr.msra.gmra.mxu1 %v511_v40 }
 0x35a   :  { %v768_v41 = vpop.f32.mrf.mxu1 }
 0x35c   :  { %v769_v34 = vpop.f32.mrf.mxu1 }
 0x35d   :  { %v770_v33 = vadd.f32 %v769_v34, %v768_v41 }
 0x35e   :  { %v771_v35 = vpop.f32.mrf.mxu1 }
 0x35f   :  { %v644_v43 = vadd.f32 %v770_v33, %v143_v42 }
 0x360   :  { %v772_v44 = vpop.f32.mrf.mxu1 }
 0x361   :  { %v773_v45 = vadd.f32 %v772_v44, %v771_v35  ;;  %650 = vrot.lane.b32.xlu0 %v644_v43, %s941_s0 }
 0x363   :  { %v647_v46 = vadd.f32 %v773_v45, %v143_v42 }
 0x365   :  { %652 = vrot.lane.b32.xlu0 %v647_v46, %s941_s0 }
 0x3d3   :  { %v651_v47 = vpop.permute.xlu0 %650 }
 0x3d4   :  { %v654_v48 = vadd.f32 %v651_v47, %v366_v12 }
 0x3d6   :  { %656 = vst [vmem:[#allocation8] sm:$0xff] %v654_v48 }
 0x3d7   :  { %v653_v49 = vpop.permute.xlu0 %652 }
 0x3d8   :  { %v655_v50 = vadd.f32 %v653_v49, %v369_v13 }
 0x3da   :  { %657 = vst [vmem:[#allocation8 + $0x8] sm:$0xff] %v655_v50 }
 0x3db   :  { %918 = shalt.err (!%p915_p5)
}
 0x3dc   :  { %669 = dma.vmem_to_hbm [thread:$0]  %s664_s30, 256, %s996_s3, [#allocation4], %s934_s15, %s934_s15, %s935_s16  }
 0x3dd   :  { %931 = dma.done.wait [#allocation4], 256  }
 0x3de   :  { %932 = vsyncadd [#allocation4], 4294967040 }
 0x3df   :  { %673 = vsyncpa [#allocation3], 1 }
 0x3e0   :  { %674 = vsyncpa [#allocation6], 1 }
 0x3e1   :  { %675 = vsyncpa [#allocation4], 1 }

</bundles_post_ra>
